<compile_context>
chip_gen: v5e
topology: v5e:2x2
jax: 0.10.0
libtpu: 0.0.40
codegen_flags: <defaults>
</compile_context>

<pallas_src>
import numpy as np
import jax
import jax.numpy as jnp
from jax.experimental import pallas as pl
from jax.experimental.pallas import tpu as pltpu


def _round_up(x, m):
    return ((x + m - 1) // m) * m


# ----------------------------------------------------------------------------
# coords helper (exact replica of coords_fmap2orig, done on host as glue)
# ----------------------------------------------------------------------------
def coords_fmap2orig_np(h, w, stride):
    shifts_x = np.arange(0, w * stride, stride, dtype=np.float32)
    shifts_y = np.arange(0, h * stride, stride, dtype=np.float32)
    shift_y, shift_x = np.meshgrid(shifts_y, shifts_x, indexing="ij")
    coords = np.stack([shift_x.reshape(-1), shift_y.reshape(-1)], -1) + stride // 2
    return coords.astype(np.float32)  # [h*w, 2]


# ----------------------------------------------------------------------------
# Pallas kernel: one (batch, location-tile) block, N on lanes.
#   clscnt_ref : [1, C+1, TN] raw class logits (rows 0..C-1) + centerness (row C)
#   reg_ref    : [1, 4, TN]   ltrb offsets
#   coords_ref : [4, TN]      rows (cx, cy, cx, cy) in original-image coords
# outputs:
#   scores_ref  : [1, 1, TN]  sqrt(sigmoid(max_c logit) * sigmoid(cnt logit))
#   classes_ref : [1, 1, TN]  argmax class index + 1 (int32)
#   boxes_ref   : [1, 4, TN]  rows (x1, y1, x2, y2)
# ----------------------------------------------------------------------------
def _detect_kernel(clscnt_ref, reg_ref, coords_ref,
                   scores_ref, classes_ref, boxes_ref):
    x = clscnt_ref[0].astype(jnp.float32)        # (C+1, TN)
    num_classes = x.shape[0] - 1
    cnt_logit = x[num_classes:num_classes + 1, :]  # (1, TN)

    # fused running max / argmax over the class rows (first occurrence on ties,
    # strictly-greater update keeps the earliest index -> torch.max semantics).
    best_val = x[0:1, :]
    best_idx = jnp.zeros_like(best_val, dtype=jnp.int32)
    for i in range(1, num_classes):
        v = x[i:i + 1, :]
        upd = v > best_val
        best_val = jnp.where(upd, v, best_val)
        best_idx = jnp.where(upd, jnp.int32(i), best_idx)

    # sigmoid only on the winning logit + centerness (monotonicity of sigmoid
    # means max/argmax commute with it).
    scores_ref[0] = jnp.sqrt(jax.nn.sigmoid(best_val) * jax.nn.sigmoid(cnt_logit))
    classes_ref[0] = best_idx + 1

    # boxes: x1y1 = coords - ltrb[:2], x2y2 = coords + ltrb[2:]  (row-wise, lane-dense)
    reg = reg_ref[0].astype(jnp.float32)          # (4, TN)
    co = coords_ref[...]                          # (4, TN)
    xy1 = co[0:2, :] - reg[0:2, :]
    xy2 = co[2:4, :] + reg[2:4, :]
    boxes_ref[0] = jnp.concatenate([xy1, xy2], axis=0)


# ----------------------------------------------------------------------------
# Host-side NMS / post-processing (exact NumPy replication of the torch code).
# TODO(synk): score-threshold masking + greedy NMS produce data-dependent
# (variable-length) shapes with no static-shape Pallas equivalent; kept on host.
# ----------------------------------------------------------------------------
def _box_nms_np(boxes, scores, thr):
    if boxes.shape[0] == 0:
        return np.zeros(0, dtype=np.int64)
    assert boxes.shape[-1] == 4
    x1, y1, x2, y2 = boxes[:, 0], boxes[:, 1], boxes[:, 2], boxes[:, 3]
    areas = (x2 - x1 + 1) * (y2 - y1 + 1)
    order = np.argsort(-scores, kind="stable")
    keep = []
    while order.size > 0:
        i = int(order[0])
        keep.append(i)
        if order.size == 1:
            break
        xmin = np.maximum(x1[order[1:]], x1[i])
        ymin = np.maximum(y1[order[1:]], y1[i])
        xmax = np.minimum(x2[order[1:]], x2[i])
        ymax = np.minimum(y2[order[1:]], y2[i])
        inter = np.clip(xmax - xmin, 0, None) * np.clip(ymax - ymin, 0, None)
        iou = inter / (areas[i] + areas[order[1:]] - inter)
        idx = np.nonzero(iou <= thr)[0]
        if idx.size == 0:
            break
        order = order[idx + 1]
    return np.asarray(keep, dtype=np.int64)


def _batched_nms_np(boxes, scores, idxs, iou_threshold):
    if boxes.size == 0:
        return np.empty((0,), dtype=np.int64)
    max_coordinate = boxes.max()
    offsets = idxs.astype(boxes.dtype) * (max_coordinate + 1)
    boxes_for_nms = boxes + offsets[:, None]
    return _box_nms_np(boxes_for_nms, scores, iou_threshold)


def _post_process(cls_scores_topk, cls_classes_topk, boxes_topk,
                  score_threshold, nms_iou_threshold):
    _s, _c, _b = [], [], []
    for batch in range(cls_classes_topk.shape[0]):
        mask = cls_scores_topk[batch] >= score_threshold
        sb = cls_scores_topk[batch][mask]
        cb = cls_classes_topk[batch][mask]
        bb = boxes_topk[batch][mask]
        keep = _batched_nms_np(bb, sb, cb, nms_iou_threshold)
        _s.append(sb[keep])
        _c.append(cb[keep])
        _b.append(bb[keep])
    return np.stack(_s, 0), np.stack(_c, 0), np.stack(_b, 0)


# ----------------------------------------------------------------------------
# Wrapper
# ----------------------------------------------------------------------------
def detect_head_forward(cls_list, cnt_list, reg_list, strides,
                        score_threshold, nms_iou_threshold,
                        max_detection_boxes_num):
    B = cls_list[0].shape[0]
    C = cls_list[0].shape[1]

    # NCHW -> [B, C, H*W], concat along locations (same location order as the
    # torch NHWC-flatten, channels just end up on the sublane axis instead).
    def flatten_cat(xs):
        return jnp.concatenate(
            [x.reshape(x.shape[0], x.shape[1], -1) for x in xs], axis=-1)

    cls_logits = flatten_cat(cls_list)                # [B, C, N]
    cnt_logits = flatten_cat(cnt_list)                # [B, 1, N]
    reg_preds = flatten_cat(reg_list)                 # [B, 4, N]
    clscnt = jnp.concatenate([cls_logits, cnt_logits], axis=1)  # [B, C+1, N]

    coords = np.concatenate(
        [coords_fmap2orig_np(x.shape[2], x.shape[3], s)
         for x, s in zip(cls_list, strides)], axis=0)            # [N, 2]
    coords4 = np.concatenate([coords.T, coords.T], axis=0)       # [4, N]

    N = clscnt.shape[-1]
    TN = min(2048, _round_up(N, 128))     # lane-tile, multiple of 128
    N_pad = _round_up(N, TN)
    pad = N_pad - N
    if pad:
        clscnt = jnp.pad(clscnt, ((0, 0), (0, 0), (0, pad)))
        reg_preds = jnp.pad(reg_preds, ((0, 0), (0, 0), (0, pad)))
        coords4 = np.pad(coords4, ((0, 0), (0, pad)))
    coords4 = jnp.asarray(coords4, dtype=jnp.float32)

    grid = (B, N_pad // TN)

    scores, classes, boxes = pl.pallas_call(
        _detect_kernel,
        out_shape=(
            jax.ShapeDtypeStruct((B, 1, N_pad), jnp.float32),
            jax.ShapeDtypeStruct((B, 1, N_pad), jnp.int32),
            jax.ShapeDtypeStruct((B, 4, N_pad), jnp.float32),
        ),
        grid=grid,
        in_specs=[
            pl.BlockSpec((1, C + 1, TN), lambda b, n: (b, 0, n)),
            pl.BlockSpec((1, 4, TN), lambda b, n: (b, 0, n)),
            pl.BlockSpec((4, TN), lambda b, n: (0, n)),
        ],
        out_specs=(
            pl.BlockSpec((1, 1, TN), lambda b, n: (b, 0, n)),
            pl.BlockSpec((1, 1, TN), lambda b, n: (b, 0, n)),
            pl.BlockSpec((1, 4, TN), lambda b, n: (b, 0, n)),
        ),
        compiler_params=pltpu.CompilerParams(
            dimension_semantics=("parallel", "parallel")),
    )(clscnt, reg_preds, coords4)

    # drop padding, restore the torch-facing layouts
    cls_scores = scores[:, 0, :N]                               # [B, N]
    cls_classes = classes[:, 0, :N]                             # [B, N]
    boxes_bn4 = jnp.transpose(boxes[:, :, :N], (0, 2, 1))       # [B, N, 4]

    # TODO(synk): top_k over N plus device->host transfer + NumPy NMS dominate
    # end-to-end latency; data-dependent shapes keep them outside the kernel.
    max_num = min(max_detection_boxes_num, N)
    topk_scores, topk_ind = jax.lax.top_k(cls_scores, max_num)  # sorted desc
    cls_classes_topk = jnp.take_along_axis(cls_classes, topk_ind, axis=1)
    boxes_topk = jnp.take_along_axis(boxes_bn4, topk_ind[:, :, None], axis=1)

    jax.block_until_ready((topk_scores, cls_classes_topk, boxes_topk))

    return _post_process(np.asarray(topk_scores),
                         np.asarray(cls_classes_topk),
                         np.asarray(boxes_topk),
                         score_threshold, nms_iou_threshold)


# ----------------------------------------------------------------------------
# Demo
# ----------------------------------------------------------------------------
if __name__ == "__main__":
    key = jax.random.PRNGKey(0)
    B, num_classes = 2, 4
    level_hw = [(8, 8), (4, 4)]
    strides = [8, 16]

    cls_list, cnt_list, reg_list = [], [], []
    for (h, w) in level_hw:
        key, k1, k2, k3 = jax.random.split(key, 4)
        cls_list.append(jax.random.normal(k1, (B, num_classes, h, w), jnp.float32))
        cnt_list.append(jax.random.normal(k2, (B, 1, h, w), jnp.float32))
        # positive-ish ltrb offsets like FCOS regression outputs
        reg_list.append(jnp.abs(jax.random.normal(k3, (B, 4, h, w), jnp.float32)) * 8.0)

    scores, classes, boxes = detect_head_forward(
        cls_list, cnt_list, reg_list, strides,
        score_threshold=0.0,        # keep all topk so per-batch stack has equal lengths
        nms_iou_threshold=1.0,      # keep all (demo-safe; NMS logic itself is exact)
        max_detection_boxes_num=20,
    )

    assert boxes.shape[-1] == 4
    assert scores.shape == classes.shape
    print("KERNEL_OK")
</pallas_src>

<mosaic_0001>
module attributes {stable_mosaic.version = 11 : i64} {
  func.func @_detect_kernel(%arg0: i32, %arg1: i32, %arg2: memref<1x5x128xf32, #tpu.memory_space<vmem>>, %arg3: memref<1x4x128xf32, #tpu.memory_space<vmem>>, %arg4: memref<4x128xf32, #tpu.memory_space<vmem>>, %arg5: memref<1x1x128xf32, #tpu.memory_space<vmem>>, %arg6: memref<1x1x128xi32, #tpu.memory_space<vmem>>, %arg7: memref<1x4x128xf32, #tpu.memory_space<vmem>>) attributes {dimension_semantics = [#tpu.dimension_semantics<parallel>, #tpu.dimension_semantics<parallel>], iteration_bounds = array<i64: 2, 1>, scalar_prefetch = 0 : i64, scratch_operands = 0 : i64, tpu.core_type = #tpu.core_type<tc>, window_params = [{transform_indices = @transform_0, window_bounds = array<i64: 1, 5, 128>}, {transform_indices = @transform_1, window_bounds = array<i64: 1, 4, 128>}, {transform_indices = @transform_2, window_bounds = array<i64: 4, 128>}, {transform_indices = @transform_3, window_bounds = array<i64: 1, 1, 128>}, {transform_indices = @transform_4, window_bounds = array<i64: 1, 1, 128>}, {transform_indices = @transform_5, window_bounds = array<i64: 1, 4, 128>}]} {
    %c0 = arith.constant 0 : index
    %c0_0 = arith.constant 0 : index
    %c0_1 = arith.constant 0 : index
    %0 = vector.load %arg2[%c0, %c0_0, %c0_1] : memref<1x5x128xf32, #tpu.memory_space<vmem>>, vector<1x5x128xf32>
    %1 = vector.shape_cast %0 : vector<1x5x128xf32> to vector<5x128xf32>
    %2 = vector.extract_strided_slice %1 {offsets = [4, 0], sizes = [1, 128], strides = [1, 1]} : vector<5x128xf32> to vector<1x128xf32>
    %3 = vector.extract_strided_slice %1 {offsets = [0, 0], sizes = [1, 128], strides = [1, 1]} : vector<5x128xf32> to vector<1x128xf32>
    %c0_i32 = arith.constant 0 : i32
    %4 = vector.broadcast %c0_i32 : i32 to vector<1x128xi32>
    %5 = vector.extract_strided_slice %1 {offsets = [1, 0], sizes = [1, 128], strides = [1, 1]} : vector<5x128xf32> to vector<1x128xf32>
    %6 = arith.cmpf ogt, %5, %3 : vector<1x128xf32>
    %7 = arith.select %6, %5, %3 : vector<1x128xi1>, vector<1x128xf32>
    %c1_i32 = arith.constant 1 : i32
    %8 = vector.broadcast %c1_i32 : i32 to vector<1x128xi32>
    %9 = arith.select %6, %8, %4 : vector<1x128xi1>, vector<1x128xi32>
    %10 = vector.extract_strided_slice %1 {offsets = [2, 0], sizes = [1, 128], strides = [1, 1]} : vector<5x128xf32> to vector<1x128xf32>
    %11 = arith.cmpf ogt, %10, %7 : vector<1x128xf32>
    %12 = arith.select %11, %10, %7 : vector<1x128xi1>, vector<1x128xf32>
    %c2_i32 = arith.constant 2 : i32
    %13 = vector.broadcast %c2_i32 : i32 to vector<1x128xi32>
    %14 = arith.select %11, %13, %9 : vector<1x128xi1>, vector<1x128xi32>
    %15 = vector.extract_strided_slice %1 {offsets = [3, 0], sizes = [1, 128], strides = [1, 1]} : vector<5x128xf32> to vector<1x128xf32>
    %16 = arith.cmpf ogt, %15, %12 : vector<1x128xf32>
    %17 = arith.select %16, %15, %12 : vector<1x128xi1>, vector<1x128xf32>
    %c3_i32 = arith.constant 3 : i32
    %18 = vector.broadcast %c3_i32 : i32 to vector<1x128xi32>
    %19 = arith.select %16, %18, %14 : vector<1x128xi1>, vector<1x128xi32>
    %20 = arith.negf %17 : vector<1x128xf32>
    %21 = math.exp %20 : vector<1x128xf32>
    %cst = arith.constant 1.000000e+00 : f32
    %22 = vector.broadcast %cst : f32 to vector<1x128xf32>
    %23 = arith.addf %22, %21 : vector<1x128xf32>
    %24 = arith.divf %22, %23 : vector<1x128xf32>
    %25 = arith.negf %2 : vector<1x128xf32>
    %26 = math.exp %25 : vector<1x128xf32>
    %cst_2 = arith.constant 1.000000e+00 : f32
    %27 = vector.broadcast %cst_2 : f32 to vector<1x128xf32>
    %28 = arith.addf %27, %26 : vector<1x128xf32>
    %29 = arith.divf %27, %28 : vector<1x128xf32>
    %30 = arith.mulf %24, %29 : vector<1x128xf32>
    %31 = math.sqrt %30 : vector<1x128xf32>
    %c0_3 = arith.constant 0 : index
    %c0_4 = arith.constant 0 : index
    %c0_5 = arith.constant 0 : index
    %32 = vector.load %arg5[%c0_3, %c0_4, %c0_5] : memref<1x1x128xf32, #tpu.memory_space<vmem>>, vector<1x1x128xf32>
    %33 = vector.shape_cast %32 : vector<1x1x128xf32> to vector<1x128xf32>
    %34 = vector.shape_cast %31 : vector<1x128xf32> to vector<1x1x128xf32>
    tpu.vector_store %arg5[%c0_3, %c0_4, %c0_5], %34 {strides = array<i32>} : memref<1x1x128xf32, #tpu.memory_space<vmem>>, vector<1x1x128xf32>,
    %c1_i32_6 = arith.constant 1 : i32
    %35 = vector.broadcast %c1_i32_6 : i32 to vector<1x128xi32>
    %36 = arith.addi %19, %35 : vector<1x128xi32>
    %c0_7 = arith.constant 0 : index
    %c0_8 = arith.constant 0 : index
    %c0_9 = arith.constant 0 : index
    %37 = vector.load %arg6[%c0_7, %c0_8, %c0_9] : memref<1x1x128xi32, #tpu.memory_space<vmem>>, vector<1x1x128xi32>
    %38 = vector.shape_cast %37 : vector<1x1x128xi32> to vector<1x128xi32>
    %39 = vector.shape_cast %36 : vector<1x128xi32> to vector<1x1x128xi32>
    tpu.vector_store %arg6[%c0_7, %c0_8, %c0_9], %39 {strides = array<i32>} : memref<1x1x128xi32, #tpu.memory_space<vmem>>, vector<1x1x128xi32>,
    %c0_10 = arith.constant 0 : index
    %c0_11 = arith.constant 0 : index
    %c0_12 = arith.constant 0 : index
    %40 = vector.load %arg3[%c0_10, %c0_11, %c0_12] : memref<1x4x128xf32, #tpu.memory_space<vmem>>, vector<1x4x128xf32>
    %41 = vector.shape_cast %40 : vector<1x4x128xf32> to vector<4x128xf32>
    %c0_13 = arith.constant 0 : index
    %c0_14 = arith.constant 0 : index
    %42 = vector.load %arg4[%c0_13, %c0_14] : memref<4x128xf32, #tpu.memory_space<vmem>>, vector<4x128xf32>
    %43 = vector.extract_strided_slice %42 {offsets = [0, 0], sizes = [2, 128], strides = [1, 1]} : vector<4x128xf32> to vector<2x128xf32>
    %44 = vector.extract_strided_slice %41 {offsets = [0, 0], sizes = [2, 128], strides = [1, 1]} : vector<4x128xf32> to vector<2x128xf32>
    %45 = arith.subf %43, %44 : vector<2x128xf32>
    %46 = vector.extract_strided_slice %42 {offsets = [2, 0], sizes = [2, 128], strides = [1, 1]} : vector<4x128xf32> to vector<2x128xf32>
    %47 = vector.extract_strided_slice %41 {offsets = [2, 0], sizes = [2, 128], strides = [1, 1]} : vector<4x128xf32> to vector<2x128xf32>
    %48 = arith.addf %46, %47 : vector<2x128xf32>
    %49 = tpu.concatenate %45, %48 in 0 : vector<2x128xf32>, vector<2x128xf32> -> vector<4x128xf32>
    %c0_15 = arith.constant 0 : index
    %c0_16 = arith.constant 0 : index
    %c0_17 = arith.constant 0 : index
    %50 = vector.load %arg7[%c0_15, %c0_16, %c0_17] : memref<1x4x128xf32, #tpu.memory_space<vmem>>, vector<1x4x128xf32>
    %51 = vector.shape_cast %50 : vector<1x4x128xf32> to vector<4x128xf32>
    %52 = vector.shape_cast %49 : vector<4x128xf32> to vector<1x4x128xf32>
    tpu.vector_store %arg7[%c0_15, %c0_16, %c0_17], %52 {strides = array<i32>} : memref<1x4x128xf32, #tpu.memory_space<vmem>>, vector<1x4x128xf32>,
    return
  }
  func.func @transform_0(%arg0: i32, %arg1: i32) -> (i32, i32, i32) {
    %c0_i32 = arith.constant 0 : i32
    %c0_i32_0 = arith.constant 0 : i32
    return %arg0, %c0_i32, %arg1 : i32, i32, i32
  }
  func.func @transform_1(%arg0: i32, %arg1: i32) -> (i32, i32, i32) {
    %c0_i32 = arith.constant 0 : i32
    %c0_i32_0 = arith.constant 0 : i32
    return %arg0, %c0_i32, %arg1 : i32, i32, i32
  }
  func.func @transform_2(%arg0: i32, %arg1: i32) -> (i32, i32) {
    %c0_i32 = arith.constant 0 : i32
    %c0_i32_0 = arith.constant 0 : i32
    return %c0_i32, %arg1 : i32, i32
  }
  func.func @transform_3(%arg0: i32, %arg1: i32) -> (i32, i32, i32) {
    %c0_i32 = arith.constant 0 : i32
    %c0_i32_0 = arith.constant 0 : i32
    return %arg0, %c0_i32, %arg1 : i32, i32, i32
  }
  func.func @transform_4(%arg0: i32, %arg1: i32) -> (i32, i32, i32) {
    %c0_i32 = arith.constant 0 : i32
    %c0_i32_0 = arith.constant 0 : i32
    return %arg0, %c0_i32, %arg1 : i32, i32, i32
  }
  func.func @transform_5(%arg0: i32, %arg1: i32) -> (i32, i32, i32) {
    %c0_i32 = arith.constant 0 : i32
    %c0_i32_0 = arith.constant 0 : i32
    return %arg0, %c0_i32, %arg1 : i32, i32, i32
  }
}

</mosaic_0001>

<bundles_post_ra>
// kernel: tpu_custom_call.1
= control target key start
LH: loop header
LB: loop body
LE: loop exit
PB: predicated region body
PF: predicated region fallthrough
CT: control target
= control target key end

     0   :  { %11 = vsyncpa [#allocation3], 0  ;;  %s1039_s0 = inlined_call_operand.vmem [shape: f32[2,5,128], index: 0, kind: input, shape index: {}]   ;;  %s1040_s1 = inlined_call_operand.vmem [shape: f32[2,4,128], index: 1, kind: input, shape index: {}]   ;;  %s1041_s2 = inlined_call_operand.vmem [shape: f32[4,128], index: 2, kind: input, shape index: {}]   ;;  %s1042_s3 = inlined_call_operand.hbm [shape: f32[2,1,128], index: 3, kind: output, shape index: {0}]   ;;  %s1043_s4 = inlined_call_operand.hbm [shape: s32[2,1,128], index: 4, kind: output, shape index: {1}]   ;;  %s1044_s5 = inlined_call_operand.hbm [shape: f32[2,4,128], index: 5, kind: output, shape index: {2}]  }
   0x1   :  { %13 = vsyncpa [#allocation3 + $0x1], 0 }
   0x2   :  { %14 = vsyncpa [#allocation5], 0 }
   0x3   :  { %16 = vsyncpa [#allocation5 + $0x1], 0  ;;  %s866_s18 = smov 0   ;;  %s868_s19 = smov 0  }
   0x4   :  { %s870_s20 = smov 0   ;;  %s872_s21 = smov 0  }
   0x5   :  { %s874_s22 = smov 0   ;;  %s876_s23 = smov 0  }
   0x6 LB: > { %s604_s24 = sadd.s32 4294967295, %s833_s23   ;;  %s1045_s25 = sadd.s32 4294967294, %s833_s23   ;;  %s833_s23 = sphi %s876_s23, %s22_s23   ;;  %s829_s22 = sphi %s874_s22, %s1059_s22   ;;  %s825_s21 = sphi %s872_s21, %s1058_s21   ;;  %s821_s20 = sphi %s870_s20, %s1057_s20   ;;  %s817_s19 = sphi %s868_s19, %s1056_s19   ;;  %s813_s18 = sphi %s866_s18, %s1055_s18  }
   0x7   : > { %s34_s26 = sadd.s32 1, %s829_s22  ;;  %s125_s27 = sadd.s32 1, %s821_s20 }
   0x8   : > { %p36_p0 = scmp.ge.s32.totalorder %s34_s26, 2  ;;  %p135_p1 = scmp.ne.s32.totalorder %s821_s20, %s817_s19 }
   0x9   : > { %p136_p2 = scmp.eq.s32.totalorder %s604_s24, 1  ;;  %p141_p3 = scmp.ne.s32.totalorder %s817_s19, %s813_s18 }
   0xa   : > { %s1061_s26 = smov (%p36_p0, %s34_s26), 0  ;;  %p142_p5 = scmp.eq.s32.totalorder %s1045_s25, 1 }
   0xb   : > { %p908_p4 = por %p136_p2, %p135_p1  ;;  %s120_s29 = ssub.s32 %s829_s22, %s1061_s26 }
   0xc   : > { %p609_p6 = scmp.ge.s32.totalorder %s833_s23, 1  ;;  %p123_p7 = scmp.eq.s32.totalorder %s120_s29, 0 }
   0xd   : > { %p917_p8 = por %p142_p5, %p141_p3  ;;  %p243_p9 = scmp.lt.s32.totalorder %s833_s23, 3 }
   0xe   : > { %s923_s6 = scalar_select %p123_p7, %s821_s20, %s125_s27  }
   0xf   : > { %p244_p10 = pnand %p609_p6, %p243_p9 }
  0x10   : > { %p292_p11 = scmp.lt.s32.totalorder (!%p244_p10), %s825_s21, 1  ;;  %s934_s12 = sand.u32 (!%p244_p10), 1, %s817_s19  }
  0x11   : > { %247 = sbr.rel (%p244_p10) target bundleno = 93 (0x5d), region = 32  ;;  %s428_s15 = scalar_lea.hbm (!%p244_p10), %s1043_s4, %s825_s21 }
  0x12   : > { %s284_s16 = scalar_lea.vmem (!%p244_p10), [#allocation4], %s934_s12  ;;  %s945_s27 = sand.u32 (!%p244_p10), 1, %s604_s24  }
  0x13   : > { %s941_s17 = sshll.u32 (!%p244_p10), %s284_s16, 4  ;;  %s432_s29 = sshll.u32 (!%p244_p10), %s428_s15, 4  ;;  %s431_s17 = int_to_ptr.vmem [resolvable:$true] %s941_s17  ;;  %s433_s29 = int_to_ptr.hbm [resolvable:$true] %s432_s29 }
  0x14   : > { %s709_s9 = sshra.s32 (!%p244_p10), %s433_s29, 4  ;;  %s715_s13 = scalar_lea.hbm (!%p244_p10), %s1043_s4, 2  ;;  %s710_s9 = int_to_ptr.hbm [resolvable:$true] %s709_s9 }
  0x15   : > { %s711_s10 = scalar_lea.hbm (!%p244_p10), %s710_s9, 1  ;;  %p716_p1 = scmp.lt.s32.totalorder (!%p244_p10), %s710_s9, %s1043_s4 }
  0x16   : > { %s927_s7 = scalar_select %p292_p11, %s825_s21, 1  ;;  %v835_v4 = vmov 0  }
  0x17   : > { %p712_p12 = scmp.ne.s32.totalorder %s710_s9, %s711_s10  ;;  %p717_p2 = scmp.lt.s32.totalorder %s715_s13, %s711_s10 }
  0x18   : > { %s611_s8 = sshll.u32 %s927_s7, 3 }
  0x19   : > { %s298_s11 = scalar_lea.vmem %s1039_s0, %s611_s8  ;;  %s1046_s8 = scalar_lea.sflag [#allocation5], %s945_s27 }
  0x1a   : > { %v310_v0 = vld [vmem:[%s298_s11] sm:$0x1f]  ;;  %p713_p13 = pnand %p712_p12, %p908_p4  ;;  %p718_p3 = por %p717_p2, %p716_p1 }
  0x1b   : > { %v312_v1 = vrot.slane %v310_v0, 7  ;;  %v614_v2 = vmul.f32 -1.442695, %v310_v0 }
  0x1c   : > { %p714_p0 = pneg %p713_p13 }
  0x1d   : > { %vm314_vm0 = vcmp.gt.f32.partialorder %v310_v0, %v312_v1  ;;  %685 = vpow2.f32 %v614_v2 }
  0x1e   : > { %v315_v3 = vsel %vm314_vm0, %v310_v0, %v312_v1  ;;  %v316_v5 = vsel %vm314_vm0, 1, %v835_v4  ;;  %p719_p5 = pnand %p718_p3, %p714_p0 }
  0x1f   : > { %v318_v6 = vrot.slane %v315_v3, 7  ;;  %v322_v7 = vrot.slane %v316_v5, 7 }
  0x21   : > { %vm320_vm1 = vcmp.gt.f32.partialorder %v310_v0, %v318_v6 }
  0x22   : > { %v321_v8 = vsel %vm320_vm1, %v310_v0, %v318_v6  ;;  %v323_v9 = vsel %vm320_vm1, 2, %v322_v7 }
  0x23   : > { %v686_v10 = vpop.eup %685  ;;  %v325_v11 = vrot.slane %v321_v8, 7  ;;  %v329_v12 = vrot.slane %v323_v9, 7 }
  0x24   : > { %v353_v13 = vadd.f32 1.0, %v686_v10 }
  0x25   : > { %vm327_vm2 = vcmp.gt.f32.partialorder %v310_v0, %v325_v11 }
  0x26   : > { %v328_v14 = vsel %vm327_vm2, %v310_v0, %v325_v11  ;;  %v330_v15 = vsel %vm327_vm2, 3, %v329_v12  ;;  %687 = vrcp.f32 %v353_v13 }
  0x27   : > { %v613_v16 = vmul.f32 -1.442695, %v328_v14  ;;  %v386_v17 = vadd.s32 1, %v330_v15 }
  0x29   : > { %689 = vpow2.f32 %v613_v16  ;;  %387 = vst [vmem:[%s284_s16 - $0x3] sm:$0x8] %v386_v17 }
  0x2a   : > { %722 = shalt.err (!%p719_p5)
}
  0x2b   : > { %620 = dma.vmem_to_hbm [thread:$0]  (%p908_p4), %s431_s17, 16, %s433_s29, %s1046_s8   ;;  %vm359_vm3 = vweird.f32 %v353_v13  ;;  %v365_v24 = vand.u32 2147483648, %v353_v13  ;;  %v363_v26 = vand.u32 2147483647, %v353_v13  ;;  %v389_v29 = vld [vmem:[%s1041_s2] sm:$0xf] }
  0x2c   : > { %v688_v18 = vpop.eup %687  ;;  %s610_s16 = sshll.u32 %s934_s12, 2  ;;  %s616_s24 = sshll.u32 %s825_s21, 2  ;;  %vm392_vm6 = vcmask 1041408  }
  0x2d   : > { %v355_v19 = vmul.f32 %v688_v18, %v353_v13  ;;  %s612_s9 = sshll.u32 %s927_s7, 2  ;;  %s443_s13 = scalar_lea.hbm %s1044_s5, %s616_s24  ;;  %vm360_vm4 = vweird.f32 %v688_v18  ;;  %v366_v33 = vor.u32 1.1754944e-38, %v365_v24  ;;  %vm979_vm7 = vcmp.eq.f32.partialorder %v363_v26, 8.507059e+37 }
  0x2e   : > { %s305_s17 = scalar_lea.vmem %s1040_s1, %s612_s9  ;;  %s291_s29 = scalar_lea.vmem [#allocation6], %s610_s16  ;;  %vm970_vm5 = vmor %vm359_vm3, %vm360_vm4 }
  0x2f   : > { %v690_v20 = vpop.eup %689  ;;  %v356_v21 = vsub.f32 1.0, %v355_v19  ;;  %s445_s25 = sshll.u32 %s291_s29, 4  ;;  %s447_s8 = sshll.u32 %s443_s13, 4  ;;  %v388_v28 = vld [vmem:[%s305_s17] sm:$0xf]  ;;  %s446_s25 = int_to_ptr.vmem [resolvable:$true] %s445_s25  ;;  %s448_s8 = int_to_ptr.hbm [resolvable:$true] %s447_s8 }
  0x30   : > { %v334_v22 = vadd.f32 1.0, %v690_v20  ;;  %v390_v30 = vsub.f32 %v389_v29, %v388_v28  ;;  %v391_v31 = vadd.f32 %v389_v29, %v388_v28  ;;  %s737_s16 = sshra.s32 %s448_s8, 4  ;;  %s743_s13 = scalar_lea.hbm %s1044_s5, 8  ;;  %s738_s16 = int_to_ptr.hbm [resolvable:$true] %s737_s16 }
  0x31   : > { %v357_v23 = vmul.f32 %v688_v18, %v356_v21  ;;  %s739_s24 = scalar_lea.hbm %s738_s16, 4  ;;  %p744_p10 = scmp.lt.s32.totalorder %s738_s16, %s1044_s5 }
  0x32   : > { %691 = vrcp.f32 %v334_v22  ;;  %v393_v37 = vsel %vm392_vm6, %v390_v30, %v391_v31  ;;  %v346_v38 = vand.u32 2147483648, %v334_v22  ;;  %vm340_vm8 = vweird.f32 %v334_v22  ;;  %p740_p6 = scmp.ne.s32.totalorder %s738_s16, %s739_s24  ;;  %p745_p11 = scmp.lt.s32.totalorder %s743_s13, %s739_s24 }
  0x33   : > { %v358_v25 = vadd.f32 %v688_v18, %v357_v23  ;;  %394 = vst [vmem:[%s291_s29] sm:$0xf] %v393_v37  ;;  %v344_v40 = vand.u32 2147483647, %v334_v22 }
  0x34   : > { %p741_p7 = pnand %p740_p6, %p908_p4  ;;  %p746_p12 = por %p745_p11, %p744_p10 }
  0x35   : > { %v362_v35 = vsel %vm970_vm5, %v688_v18, %v358_v25 }
  0x36   : > { %p742_p9 = pneg %p741_p7 }
  0x38   : > { %v692_v32 = vpop.eup %691  ;;  %p747_p13 = pnand %p746_p12, %p742_p9 }
  0x39   : > { %v336_v34 = vmul.f32 %v692_v32, %v334_v22  ;;  %vm341_vm9 = vweird.f32 %v692_v32 }
  0x3b   : > { %v337_v39 = vsub.f32 1.0, %v336_v34 }
  0x3c   : > { %750 = shalt.err (!%p747_p13)
}
  0x3d   : > { %s1053_s17 = scalar_lea.sflag [#allocation5], %s945_s27  ;;  %v367_v41 = vsel %vm979_vm7, %v366_v33, %v362_v35  ;;  %v338_v42 = vmul.f32 %v692_v32, %v337_v39  ;;  %vm342_vm10 = vmor %vm340_vm8, %vm341_vm9  ;;  %v347_v43 = vor.u32 1.1754944e-38, %v346_v38  ;;  %vm345_vm11 = vcmp.eq.f32.partialorder %v344_v40, 8.507059e+37  ;;  %s278_s29 = scalar_lea.vmem [#allocation2], %s934_s12 }
  0x3e   : > { %621 = dma.vmem_to_hbm [thread:$0]  (%p908_p4), %s446_s25, 64, %s448_s8, %s1053_s17   ;;  %v370_v45 = vrot.slane %v367_v41, 1 }
  0x3f   : > { %v339_v44 = vadd.f32 %v692_v32, %v338_v42  ;;  %s414_s8 = scalar_lea.hbm %s1042_s3, %s825_s21  ;;  %s416_s7 = sshll.u32 %s278_s29, 4  ;;  %s417_s7 = int_to_ptr.vmem [resolvable:$true] %s416_s7 }
  0x40   : > { %s418_s10 = sshll.u32 %s414_s8, 4  ;;  %s396_s16 = scalar_lea.sflag [#allocation3], %s934_s12  ;;  %s419_s10 = int_to_ptr.hbm [resolvable:$true] %s418_s10 }
  0x41   : > { %v343_v46 = vsel %vm342_vm10, %v692_v32, %v339_v44  ;;  %s765_s24 = sshra.s32 %s419_s10, 4  ;;  %s771_s13 = scalar_lea.hbm %s1042_s3, 2  ;;  %s766_s24 = int_to_ptr.hbm [resolvable:$true] %s765_s24 }
  0x42   : > { %v348_v47 = vsel %vm345_vm11, %v347_v43, %v343_v46  ;;  %s767_s9 = scalar_lea.hbm %s766_s24, 1  ;;  %p772_p3 = scmp.lt.s32.totalorder %s766_s24, %s1042_s3 }
  0x43   : > { %v372_v48 = vmul.f32 %v370_v45, %v348_v47  ;;  %p768_p0 = scmp.ne.s32.totalorder %s766_s24, %s767_s9  ;;  %p773_p5 = scmp.lt.s32.totalorder %s771_s13, %s767_s9 }
  0x45   : > { %693 = vrsqrt.f32 %v372_v48  ;;  %vm380_vm12 = vcmp.eq.f32.partialorder %v372_v48, inf  ;;  %v383_v55 = vand.u32 2147483648, %v372_v48  ;;  %vm382_vm13 = vcmp.eq.f32.partialorder %v372_v48, 0.0  ;;  %p769_p1 = pnand %p768_p0, %p908_p4  ;;  %p774_p6 = por %p773_p5, %p772_p3 }
  0x47   : > { %p770_p2 = pneg %p769_p1 }
  0x49   : > { %p775_p7 = pnand %p774_p6, %p770_p2 }
  0x4b   : > { %v694_v49 = vpop.eup %693 }
  0x4c   : > { %v374_v50 = vmul.f32 %v694_v49, %v372_v48 }
  0x4e   : > { %v375_v51 = vmul.f32 %v694_v49, %v374_v50 }
  0x50   : > { %v376_v52 = vmul.f32 0.5, %v375_v51 }
  0x52   : > { %v377_v53 = vsub.f32 1.5, %v376_v52 }
  0x54   : > { %v378_v54 = vmul.f32 %v694_v49, %v377_v53 }
  0x56   : > { %v379_v56 = vmul.f32 %v378_v54, %v372_v48 }
  0x58   : > { %v381_v57 = vsel %vm380_vm12, %v372_v48, %v379_v56 }
  0x59   : > { %v384_v58 = vsel %vm382_vm13, %v383_v55, %v381_v57 }
  0x5a   : > { %385 = vst [vmem:[%s278_s29 - $0x3] sm:$0x8] %v384_v58 }
  0x5b   : > { %778 = shalt.err (!%p775_p7)
}
  0x5c   : > { %619 = dma.vmem_to_hbm [thread:$0]  (%p908_p4), %s417_s7, 16, %s419_s10, %s396_s16  }
  0x5d PF: > { %p635_p9 = scmp.ge.s32.totalorder %s833_s23, 2  ;;  %s459_s12 = sand.u32 1, %s813_s18  }
  0x5e   : > { %s460_s17 = scalar_lea.sflag [#allocation3], %s459_s12 }
  0x5f   : > { %p626_p10 = pnand %p635_p9, %p917_p8 }
  0x61   : > { %p627_p11 = pneg %p626_p10 }
  0x63   : > { %804 = dma.done.wait (%p627_p11), %s460_s17, 16  }
  0x64   : > { %806 = vsyncadd (%p627_p11), %s460_s17, 4294967280  ;;  %s1054_s25 = sadd.s32 4294967294, %s833_s23  }
  0x65   : > { %s468_s27 = sand.u32 1, %s1054_s25  }
  0x66   : > { %s469_s8 = scalar_lea.sflag [#allocation5], %s468_s27 }
  0x67   : > { %808 = dma.done.wait (%p627_p11), %s469_s8, 80  }
  0x68   : > { %810 = vsyncadd (%p627_p11), %s469_s8, 4294967216  ;;  %s22_s23 = sadd.s32 1, %s833_s23   ;;  %s1055_s18 = smov %s817_s19 }
  0x69   : > { %p19_p4 = scmp.ge.s32.totalorder %s22_s23, 4   ;;  %s1056_s19 = smov %s821_s20 }
  0x6a   : > { %s1057_s20 = smov %s923_s6  ;;  %s1058_s21 = smov %s829_s22 }
  0x6b   : > { %s1059_s22 = smov %s1061_s26  ;;  %21 = sbr.rel (!%p19_p4) target bundleno = 6 (0x6), region = 105 }
  0x70   :  { %484 = vsyncpa [#allocation3], 1 }
  0x71   :  { %486 = vsyncpa [#allocation3 + $0x1], 1 }
  0x72   :  { %487 = vsyncpa [#allocation5], 1 }
  0x73   :  { %489 = vsyncpa [#allocation5 + $0x1], 1 }

</bundles_post_ra>
